<compile_context>
chip_gen: v7x
topology: tpu7x:2x2x1
jax: 0.10.0
libtpu: 0.0.40
codegen_flags: <defaults>
</compile_context>

<pallas_src>
import functools

import numpy as np
import jax
import jax.numpy as jnp
from jax.experimental import pallas as pl
from jax.experimental.pallas import tpu as pltpu


# Multiple of 256 (v6e/v7x MXU) and 128 (v5e). 2048x576 f32 double-buffered is
# ~9.4 MiB (bf16: ~4.7 MiB), comfortably inside every chip's scoped VMEM.
_MAX_TILE_B = 2048


def _blink_kernel(x_ref, w1_ref, b1_ref, w2_ref, b2_ref, o_ref):
    # x_ref : (TILE_B, 576) input tile, native dtype               (VMEM)
    # w1_ref: (576, H)      pool folded into first linear           (VMEM, resident)
    # b1_ref: (1, H)        f32 bias                                (VMEM, resident)
    # w2_ref: (1, H)        f32 output-layer weight as a row        (VMEM, resident)
    # b2_ref: (1,)          f32 output-layer bias scalar            (SMEM)
    # o_ref : (1, TILE_B)   lane-dense output tile                  (VMEM)

    # Layer 1: pooling + linear fused into one MXU matmul (f32 accumulation).
    # Cast after the DMA (no-op when x already matches the weight dtype).
    x = x_ref[...].astype(w1_ref.dtype)
    z1 = jnp.dot(x, w1_ref[...], preferred_element_type=jnp.float32) + b1_ref[...]
    h = 0.5 * jnp.tanh(0.5 * z1) + 0.5            # sigmoid as a single EUP op

    # Layer 2 (H -> 1): (1,H) x (TILE_B,H)^T on the MXU emits the lane-dense
    # (1, TILE_B) row directly -- no cross-lane reduce or relayout needed.
    z2 = pl.dot(w2_ref[...], h, trans_b=True) + b2_ref[0]
    o_ref[...] = (0.5 * jnp.tanh(0.5 * z2) + 0.5).astype(o_ref.dtype)


@functools.lru_cache(maxsize=None)
def _pool_matrix(h: int, w: int) -> np.ndarray:
    """Host-side constant P (h*w, h/2*w/2): x_flat @ P == flatten(AvgPool2d(2,2)(x))."""
    hw = np.arange(h * w)
    rh, rw = hw // w, hw % w
    col = (rh // 2) * (w // 2) + (rw // 2)
    p = np.zeros((h * w, (h // 2) * (w // 2)), dtype=np.float32)
    p[hw, col] = 0.25
    return p


def prepare_blink_params(w1, b1, w2, b2, *, input_hw=(24, 24),
                         compute_dtype=jnp.float32):
    """Fold AvgPool2d(2,2) into the first Linear. Call ONCE at weight-load time."""
    h, w = input_hw
    hidden = w1.shape[0]
    P = jnp.asarray(_pool_matrix(h, w))                                  # (h*w, h/2*w/2)
    w1_eff = jnp.dot(P, w1.T.astype(jnp.float32)).astype(compute_dtype)  # (h*w, hidden)
    b1r = b1.reshape(1, hidden).astype(jnp.float32)
    w2r = w2.reshape(1, hidden).astype(jnp.float32)
    b2r = b2.reshape(1).astype(jnp.float32)
    return w1_eff, b1r, w2r, b2r


def _pick_tile_b(batch: int) -> int:
    """Largest tile <= _MAX_TILE_B dividing the batch (multiple of 256, then 128)."""
    if batch <= 256:
        return batch
    cap = min(batch, _MAX_TILE_B)
    for step in (256, 128):
        t = (cap // step) * step
        while t >= step:
            if batch % t == 0:
                return t
            t -= step
    return cap  # ragged last tile: still correct (padded rows discarded), just less even


def _batch_dim_semantics(num_tiles: int):
    """CORE_PARALLEL on v7x with an even >=2-tile grid; plain 'parallel' elsewhere."""
    try:
        kind = jax.devices()[0].device_kind.lower()
    except Exception:  # pragma: no cover - be permissive about device introspection
        kind = ""
    if "v7" in kind and num_tiles >= 2 and num_tiles % 2 == 0:
        return (pltpu.CORE_PARALLEL,)
    return (pltpu.PARALLEL,)


@jax.jit
def simple_blink_forward(x_nchw, params):
    """x_nchw: (B, 1, 24, 24) in any float dtype; params from prepare_blink_params."""
    w1_eff, b1r, w2r, b2r = params
    B = x_nchw.shape[0]
    in_feats = int(np.prod(x_nchw.shape[1:]))
    hidden = w1_eff.shape[1]
    assert w1_eff.shape[0] == in_feats

    # Stream x in its native dtype -- no wrapper astype, no extra HBM copy.
    x_flat = x_nchw.reshape(B, in_feats)

    tile_b = _pick_tile_b(B)
    num_tiles = pl.cdiv(B, tile_b)

    # TODO(synk): pipeline_mode=pl.Buffered(1) on the three resident weight
    # specs would trim ~90 KiB of VMEM double-buffering once single-buffered
    # resident specs are universally supported.
    out = pl.pallas_call(
        _blink_kernel,
        out_shape=jax.ShapeDtypeStruct((1, B), jnp.float32),
        grid=(num_tiles,),
        in_specs=[
            pl.BlockSpec((tile_b, in_feats), lambda i: (i, 0)),   # x batch tiles
            pl.BlockSpec((in_feats, hidden), lambda i: (0, 0)),   # W1_eff, resident
            pl.BlockSpec((1, hidden), lambda i: (0, 0)),          # b1, resident
            pl.BlockSpec((1, hidden), lambda i: (0, 0)),          # w2 row, resident
            pl.BlockSpec(memory_space=pltpu.MemorySpace.SMEM),    # b2 scalar
        ],
        out_specs=pl.BlockSpec((1, tile_b), lambda i: (0, i)),    # lane-dense output
        compiler_params=pltpu.CompilerParams(
            dimension_semantics=_batch_dim_semantics(num_tiles),
            vmem_limit_bytes=32 * 1024 * 1024,
        ),
    )(x_flat, w1_eff, b1r, w2r, b2r)

    return out.reshape(B, 1)


def _reference(x_nchw, w1, b1, w2, b2):
    B, _, H, W = x_nchw.shape
    x = x_nchw[:, 0]                                                 # (B, H, W)
    pooled = x.reshape(B, H // 2, 2, W // 2, 2).mean(axis=(2, 4))    # (B, H/2, W/2)
    flat = pooled.reshape(B, -1)
    h = jax.nn.sigmoid(flat @ w1.T + b1)
    return jax.nn.sigmoid(h @ w2.T + b2)


if __name__ == "__main__":
    hidden = 20
    key = jax.random.PRNGKey(0)
    kx, k1, k2, k3, k4, kx2, kx3 = jax.random.split(key, 7)

    # PyTorch-style uniform init ranges.
    in1 = 12 * 12
    bound1 = float(1.0 / np.sqrt(in1))
    bound2 = float(1.0 / np.sqrt(hidden))
    w1 = jax.random.uniform(k1, (hidden, in1), jnp.float32, -bound1, bound1)
    b1 = jax.random.uniform(k2, (hidden,), jnp.float32, -bound1, bound1)
    w2 = jax.random.uniform(k3, (1, hidden), jnp.float32, -bound2, bound2)
    b2 = jax.random.uniform(k4, (1,), jnp.float32, -bound2, bound2)

    # Fold the pool into the weights once (hoisted off the per-call path).
    params_f32 = prepare_blink_params(w1, b1, w2, b2)
    params_bf16 = prepare_blink_params(w1, b1, w2, b2, compute_dtype=jnp.bfloat16)

    # 1) Small batch, exact f32 path (module-spec shapes).
    x = jax.random.normal(kx, (2, 1, 24, 24), jnp.float32)
    out = jax.block_until_ready(simple_blink_forward(x, params_f32))
    ref = _reference(x, w1, b1, w2, b2)
    assert out.shape == (2, 1)
    assert jnp.allclose(out, ref, atol=1e-4), (out, ref)

    # 2) Larger f32 batch: exercises the evenly-dividing batch grid (tile 1280, 2 steps).
    x_big = jax.random.normal(kx2, (2560, 1, 24, 24), jnp.float32)
    out_big = jax.block_until_ready(simple_blink_forward(x_big, params_f32))
    ref_big = _reference(x_big, w1, b1, w2, b2)
    assert out_big.shape == (2560, 1)
    assert jnp.allclose(out_big, ref_big, atol=1e-4)

    # 3) bf16 input + bf16 folded weights: halves the HBM stream (tile 2048, 2 steps).
    x_bf16 = jax.random.normal(kx3, (4096, 1, 24, 24), jnp.float32).astype(jnp.bfloat16)
    out_bf = jax.block_until_ready(simple_blink_forward(x_bf16, params_bf16))
    ref_bf = _reference(x_bf16.astype(jnp.float32), w1, b1, w2, b2)
    assert out_bf.shape == (4096, 1)
    assert jnp.allclose(out_bf, ref_bf, atol=2e-2)

    print("KERNEL_OK")
</pallas_src>

<mosaic_0001>
module attributes {stable_mosaic.version = 11 : i64} {
  func.func @_blink_kernel(%arg0: i32, %arg1: memref<2x576xf32, #tpu.memory_space<vmem>>, %arg2: memref<576x20xf32, #tpu.memory_space<vmem>>, %arg3: memref<1x20xf32, #tpu.memory_space<vmem>>, %arg4: memref<1x20xf32, #tpu.memory_space<vmem>>, %arg5: memref<1xf32, #tpu.memory_space<smem>>, %arg6: memref<1x2xf32, #tpu.memory_space<vmem>>) attributes {dimension_semantics = [#tpu.dimension_semantics<parallel>], iteration_bounds = array<i64: 1>, scalar_prefetch = 0 : i64, scratch_operands = 0 : i64, tpu.core_type = #tpu.core_type<tc>, window_params = [{transform_indices = @transform_0, window_bounds = array<i64: 2, 576>}, {pipeline_mode = #tpu.pipeline_mode<synchronous>, transform_indices = @transform_1, window_bounds = array<i64: 576, 20>}, {pipeline_mode = #tpu.pipeline_mode<synchronous>, transform_indices = @transform_2, window_bounds = array<i64: 1, 20>}, {pipeline_mode = #tpu.pipeline_mode<synchronous>, transform_indices = @transform_3, window_bounds = array<i64: 1, 20>}, {transform_indices = @transform_4, window_bounds = array<i64: 1>}, {transform_indices = @transform_5, window_bounds = array<i64: 1, 2>}]} {
    %c0 = arith.constant 0 : index
    %c0_0 = arith.constant 0 : index
    %0 = vector.load %arg1[%c0, %c0_0] : memref<2x576xf32, #tpu.memory_space<vmem>>, vector<2x576xf32>
    %c0_1 = arith.constant 0 : index
    %c0_2 = arith.constant 0 : index
    %1 = vector.load %arg2[%c0_1, %c0_2] : memref<576x20xf32, #tpu.memory_space<vmem>>, vector<576x20xf32>
    %cst = arith.constant dense<0.000000e+00> : vector<2x20xf32>
    %2 = tpu.matmul %0, %1, %cst {dimension_numbers = #tpu.dot_dimension_numbers<[1], [0], [0], [1], [0, 0, 1, 1], [], []>} : vector<2x576xf32>, vector<576x20xf32>, vector<2x20xf32> -> vector<2x20xf32>
    %c0_3 = arith.constant 0 : index
    %c0_4 = arith.constant 0 : index
    %3 = vector.load %arg3[%c0_3, %c0_4] : memref<1x20xf32, #tpu.memory_space<vmem>>, vector<1x20xf32>
    %4 = vector.broadcast %3 : vector<1x20xf32> to vector<2x20xf32>
    %5 = arith.addf %2, %4 : vector<2x20xf32>
    %cst_5 = arith.constant 5.000000e-01 : f32
    %6 = vector.broadcast %cst_5 : f32 to vector<2x20xf32>
    %7 = arith.mulf %6, %5 : vector<2x20xf32>
    %8 = math.tanh %7 : vector<2x20xf32>
    %cst_6 = arith.constant 5.000000e-01 : f32
    %9 = vector.broadcast %cst_6 : f32 to vector<2x20xf32>
    %10 = arith.mulf %9, %8 : vector<2x20xf32>
    %cst_7 = arith.constant 5.000000e-01 : f32
    %11 = vector.broadcast %cst_7 : f32 to vector<2x20xf32>
    %12 = arith.addf %10, %11 : vector<2x20xf32>
    %c0_8 = arith.constant 0 : index
    %c0_9 = arith.constant 0 : index
    %13 = vector.load %arg4[%c0_8, %c0_9] : memref<1x20xf32, #tpu.memory_space<vmem>>, vector<1x20xf32>
    %cst_10 = arith.constant dense<0.000000e+00> : vector<1x2xf32>
    %14 = tpu.matmul %13, %12, %cst_10 {dimension_numbers = #tpu.dot_dimension_numbers<[1], [1], [0], [0], [0, 0, 1, 0], [], []>} : vector<1x20xf32>, vector<2x20xf32>, vector<1x2xf32> -> vector<1x2xf32>
    %c0_11 = arith.constant 0 : index
    %15 = memref.load %arg5[%c0_11] : memref<1xf32, #tpu.memory_space<smem>>
    %16 = vector.broadcast %15 : f32 to vector<1x2xf32>
    %17 = arith.addf %14, %16 : vector<1x2xf32>
    %cst_12 = arith.constant 5.000000e-01 : f32
    %18 = vector.broadcast %cst_12 : f32 to vector<1x2xf32>
    %19 = arith.mulf %18, %17 : vector<1x2xf32>
    %20 = math.tanh %19 : vector<1x2xf32>
    %cst_13 = arith.constant 5.000000e-01 : f32
    %21 = vector.broadcast %cst_13 : f32 to vector<1x2xf32>
    %22 = arith.mulf %21, %20 : vector<1x2xf32>
    %cst_14 = arith.constant 5.000000e-01 : f32
    %23 = vector.broadcast %cst_14 : f32 to vector<1x2xf32>
    %24 = arith.addf %22, %23 : vector<1x2xf32>
    %c0_15 = arith.constant 0 : index
    %c0_16 = arith.constant 0 : index
    %25 = vector.load %arg6[%c0_15, %c0_16] : memref<1x2xf32, #tpu.memory_space<vmem>>, vector<1x2xf32>
    tpu.vector_store %arg6[%c0_15, %c0_16], %24 {strides = array<i32>} : memref<1x2xf32, #tpu.memory_space<vmem>>, vector<1x2xf32>,
    return
  }
  func.func @transform_0(%arg0: i32) -> (i32, i32) {
    %c0_i32 = arith.constant 0 : i32
    %c0_i32_0 = arith.constant 0 : i32
    return %arg0, %c0_i32 : i32, i32
  }
  func.func @transform_1(%arg0: i32) -> (i32, i32) {
    %c0_i32 = arith.constant 0 : i32
    %c0_i32_0 = arith.constant 0 : i32
    %c0_i32_1 = arith.constant 0 : i32
    return %c0_i32, %c0_i32_0 : i32, i32
  }
  func.func @transform_2(%arg0: i32) -> (i32, i32) {
    %c0_i32 = arith.constant 0 : i32
    %c0_i32_0 = arith.constant 0 : i32
    %c0_i32_1 = arith.constant 0 : i32
    return %c0_i32, %c0_i32_0 : i32, i32
  }
  func.func @transform_3(%arg0: i32) -> (i32, i32) {
    %c0_i32 = arith.constant 0 : i32
    %c0_i32_0 = arith.constant 0 : i32
    %c0_i32_1 = arith.constant 0 : i32
    return %c0_i32, %c0_i32_0 : i32, i32
  }
  func.func @transform_4(%arg0: i32) -> i32 {
    %c0_i32 = arith.constant 0 : i32
    %c0_i32_0 = arith.constant 0 : i32
    return %c0_i32 : i32
  }
  func.func @transform_5(%arg0: i32) -> (i32, i32) {
    %c0_i32 = arith.constant 0 : i32
    %c0_i32_0 = arith.constant 0 : i32
    return %c0_i32, %arg0 : i32, i32
  }
}

</mosaic_0001>

<bundles_post_ra>
// kernel: simple_blink_forward.1
= control target key start
LH: loop header
LB: loop body
LE: loop exit
PB: predicated region body
PF: predicated region fallthrough
CT: control target
= control target key end

     0   :  { %v670_v43 = vmov 1983009808   ;;  %v109_v45 = vlaneseq  ;;  %s948_s0 = inlined_call_operand.vmem [shape: f32[2,576], index: 0, kind: input, shape index: {}]   ;;  %s949_s1 = inlined_call_operand.vmem [shape: f32[576,20], index: 1, kind: input, shape index: {}]   ;;  %s950_s2 = inlined_call_operand.vmem [shape: f32[1,20], index: 2, kind: input, shape index: {}]   ;;  %s951_s3 = inlined_call_operand.vmem [shape: f32[1,20], index: 3, kind: input, shape index: {}]   ;;  %s952_s4 = inlined_call_operand.<no memory space> [shape: f32[1], index: 4, kind: input, shape index: {}]   ;;  %s953_s5 = inlined_call_operand.hbm [shape: f32[1,2], index: 5, kind: output, shape index: {}]  }
   0x1   :  { %v40_v0 = vld [vmem:[%s949_s1 + $0x80] sm:$0xff]  ;;  %v41_v1 = vld [vmem:[%s949_s1 + $0x88] sm:$0xff]  ;;  %v42_v11 = vld [vmem:[%s949_s1 + $0x90] sm:$0xff]  ;;  %v107_v44 = vunpack.c.l.s4 %v670_v43 }
   0x2   :  { %v24_v2 = vld [vmem:[%s949_s1] sm:$0xff]  ;;  %v560_v3 = vpack.c.bf16 %v41_v1, %v40_v0  ;;  %v25_v4 = vld [vmem:[%s949_s1 + $0x8] sm:$0xff]  ;;  %v43_v13 = vld [vmem:[%s949_s1 + $0x98] sm:$0xff]  ;;  %v110_v60 = vshrl.u32 %v109_v45, 7 }
   0x3   :  { %v72_v5 = vld [vmem:[%s949_s1 + $0x180] sm:$0xff]  ;;  %v73_v6 = vld [vmem:[%s949_s1 + $0x188] sm:$0xff]  ;;  %v562_v7 = vpack.c.bf16 %v25_v4, %v24_v2  ;;  %v26_v14 = vld [vmem:[%s949_s1 + $0x10] sm:$0xff]  ;;  %v564_v16 = vpack.c.bf16 %v43_v13, %v42_v11  ;;  %v108_v59 = vunpack.c.0.s8 %v107_v44 }
   0x4   :  { %v592_v8 = vpack.c.bf16 %v73_v6, %v72_v5  ;;  %v56_v9 = vld [vmem:[%s949_s1 + $0x100] sm:$0xff]  ;;  %v57_v10 = vld [vmem:[%s949_s1 + $0x108] sm:$0xff]  ;;  %561 = vmatprep.subr.bf16.mxu0 %v560_v3  ;;  %v27_v15 = vld [vmem:[%s949_s1 + $0x18] sm:$0xff] }
   0x5   :  { %v594_v12 = vpack.c.bf16 %v57_v10, %v56_v9  ;;  %563 = vmatpush3.bf16.msra.mxu0 %v562_v7  ;;  %v566_v17 = vpack.c.bf16 %v27_v15, %v26_v14  ;;  %v74_v18 = vld [vmem:[%s949_s1 + $0x190] sm:$0xff]  ;;  %v75_v19 = vld [vmem:[%s949_s1 + $0x198] sm:$0xff]  ;;  %v44_v23 = vld [vmem:[%s949_s1 + $0xa0] sm:$0xff]  ;;  %v111_v10 = vsub.s32 %v108_v59, %v110_v60 }
   0x6   :  { %593 = vmatprep.subr.bf16.mxu1 %v592_v8  ;;  %v58_v20 = vld [vmem:[%s949_s1 + $0x110] sm:$0xff]  ;;  %v596_v21 = vpack.c.bf16 %v75_v19, %v74_v18  ;;  %v59_v22 = vld [vmem:[%s949_s1 + $0x118] sm:$0xff]  ;;  %v45_v24 = vld [vmem:[%s949_s1 + $0xa8] sm:$0xff]  ;;  %565 = vmatprep.subr.bf16.mxu0 %v564_v16 }
   0x7   :  { %595 = vmatpush3.bf16.msra.mxu1 %v594_v12  ;;  %v598_v25 = vpack.c.bf16 %v59_v22, %v58_v20  ;;  %v568_v26 = vpack.c.bf16 %v45_v24, %v44_v23  ;;  %v28_v27 = vld [vmem:[%s949_s1 + $0x20] sm:$0xff]  ;;  %v29_v28 = vld [vmem:[%s949_s1 + $0x28] sm:$0xff]  ;;  %v46_v35 = vld [vmem:[%s949_s1 + $0xb0] sm:$0xff] }
   0x8   :  { %v76_v29 = vld [vmem:[%s949_s1 + $0x1a0] sm:$0xff]  ;;  %597 = vmatprep.subr.bf16.mxu1 %v596_v21  ;;  %v77_v30 = vld [vmem:[%s949_s1 + $0x1a8] sm:$0xff]  ;;  %v570_v33 = vpack.c.bf16 %v29_v28, %v28_v27  ;;  %v47_v36 = vld [vmem:[%s949_s1 + $0xb8] sm:$0xff] }
   0x9   :  { %v60_v31 = vld [vmem:[%s949_s1 + $0x120] sm:$0xff]  ;;  %v61_v32 = vld [vmem:[%s949_s1 + $0x128] sm:$0xff]  ;;  %567 = vmatpush3.bf16.msra.mxu0 %v566_v17  ;;  %v600_v34 = vpack.c.bf16 %v77_v30, %v76_v29  ;;  %v30_v37 = vld [vmem:[%s949_s1 + $0x30] sm:$0xff]  ;;  %v572_v39 = vpack.c.bf16 %v47_v36, %v46_v35 }
   0xa   :  { %569 = vmatprep.subr.bf16.mxu0 %v568_v26  ;;  %v602_v38 = vpack.c.bf16 %v61_v32, %v60_v31  ;;  %v31_v40 = vld [vmem:[%s949_s1 + $0x38] sm:$0xff]  ;;  %v78_v41 = vld [vmem:[%s949_s1 + $0x1b0] sm:$0xff]  ;;  %v48_v49 = vld [vmem:[%s949_s1 + $0xc0] sm:$0xff] }
   0xb   :  { %599 = vmatpush3.bf16.msra.mxu1 %v598_v25  ;;  %v79_v42 = vld [vmem:[%s949_s1 + $0x1b8] sm:$0xff]  ;;  %v62_v47 = vld [vmem:[%s949_s1 + $0x130] sm:$0xff]  ;;  %v49_v50 = vld [vmem:[%s949_s1 + $0xc8] sm:$0xff]  ;;  %v574_v51 = vpack.c.bf16 %v31_v40, %v30_v37 }
   0xc   :  { %601 = vmatprep.subr.bf16.mxu1 %v600_v34  ;;  %v604_v46 = vpack.c.bf16 %v79_v42, %v78_v41  ;;  %v63_v48 = vld [vmem:[%s949_s1 + $0x138] sm:$0xff]  ;;  %v80_v52 = vld [vmem:[%s949_s1 + $0x1c0] sm:$0xff]  ;;  %v81_v53 = vld [vmem:[%s949_s1 + $0x1c8] sm:$0xff]  ;;  %v576_v55 = vpack.c.bf16 %v49_v50, %v48_v49 }
   0xd   :  { %571 = vmatpush3.bf16.msra.mxu0 %v570_v33  ;;  %v606_v54 = vpack.c.bf16 %v63_v48, %v62_v47  ;;  %v32_v56 = vld [vmem:[%s949_s1 + $0x40] sm:$0xff]  ;;  %v33_v57 = vld [vmem:[%s949_s1 + $0x48] sm:$0xff]  ;;  %v608_v61 = vpack.c.bf16 %v81_v53, %v80_v52  ;;  %v50_v63 = vld [vmem:[%s949_s1 + $0xd0] sm:$0xff] }
   0xe   :  { %573 = vmatprep.subr.bf16.mxu0 %v572_v39  ;;  %v64_v58 = vld [vmem:[%s949_s1 + $0x140] sm:$0xff]  ;;  %v65_v62 = vld [vmem:[%s949_s1 + $0x148] sm:$0xff]  ;;  %v51_v0 = vld [vmem:[%s949_s1 + $0xd8] sm:$0xff]  ;;  %v578_v3 = vpack.c.bf16 %v33_v57, %v32_v56 }
   0xf   :  { %603 = vmatpush3.bf16.msra.mxu1 %v602_v38  ;;  %v82_v1 = vld [vmem:[%s949_s1 + $0x1d0] sm:$0xff]  ;;  %v83_v2 = vld [vmem:[%s949_s1 + $0x1d8] sm:$0xff]  ;;  %v610_v5 = vpack.c.bf16 %v65_v62, %v64_v58  ;;  %v580_v6 = vpack.c.bf16 %v51_v0, %v50_v63  ;;  %v52_v12 = vld [vmem:[%s949_s1 + $0xe0] sm:$0xff] }
  0x10   :  { %605 = vmatprep.subr.bf16.mxu1 %v604_v46  ;;  %v34_v4 = vld [vmem:[%s949_s1 + $0x50] sm:$0xff]  ;;  %v35_v7 = vld [vmem:[%s949_s1 + $0x58] sm:$0xff]  ;;  %v612_v11 = vpack.c.bf16 %v83_v2, %v82_v1  ;;  %v53_v13 = vld [vmem:[%s949_s1 + $0xe8] sm:$0xff] }
  0x11   :  { %575 = vmatpush3.bf16.msra.mxu0 %v574_v51  ;;  %v66_v8 = vld [vmem:[%s949_s1 + $0x150] sm:$0xff]  ;;  %v67_v9 = vld [vmem:[%s949_s1 + $0x158] sm:$0xff]  ;;  %v84_v14 = vld [vmem:[%s949_s1 + $0x1e0] sm:$0xff]  ;;  %v582_v16 = vpack.c.bf16 %v35_v7, %v34_v4  ;;  %v584_v19 = vpack.c.bf16 %v53_v13, %v52_v12 }
  0x12   :  { %577 = vmatprep.subr.bf16.mxu0 %v576_v55  ;;  %v85_v15 = vld [vmem:[%s949_s1 + $0x1e8] sm:$0xff]  ;;  %v614_v17 = vpack.c.bf16 %v67_v9, %v66_v8  ;;  %v22_v18 = vld [vmem:[%s948_s0] sm:$0xff]  ;;  %v54_v27 = vld [vmem:[%s949_s1 + $0xf0] sm:$0xff] }
  0x13   :  { %607 = vmatpush3.bf16.msra.mxu1 %v606_v54  ;;  %v36_v20 = vld [vmem:[%s949_s1 + $0x60] sm:$0xff]  ;;  %v37_v21 = vld [vmem:[%s949_s1 + $0x68] sm:$0xff]  ;;  %v112_v23 = vrot.slane %v22_v18, %v111_v10  ;;  %v105_v24 = vcombine.high %v22_v18, %v22_v18  ;;  %v616_v25 = vpack.c.bf16 %v85_v15, %v84_v14  ;;  %v55_v28 = vld [vmem:[%s949_s1 + $0xf8] sm:$0xff] }
  0x14   :  { %609 = vmatprep.subr.bf16.mxu1 %v608_v61  ;;  %v68_v22 = vld [vmem:[%s949_s1 + $0x160] sm:$0xff]  ;;  %v69_v26 = vld [vmem:[%s949_s1 + $0x168] sm:$0xff]  ;;  %v86_v29 = vld [vmem:[%s949_s1 + $0x1f0] sm:$0xff]  ;;  %v586_v33 = vpack.c.bf16 %v37_v21, %v36_v20  ;;  %v588_v35 = vpack.c.bf16 %v55_v28, %v54_v27 }
  0x15   :  { %579 = vmatpush3.bf16.msra.mxu0 %v578_v3  ;;  %v87_v30 = vld [vmem:[%s949_s1 + $0x1f8] sm:$0xff]  ;;  %v120_v31 = vcombine.high %v112_v23, %v112_v23  ;;  %v119_v32 = vrot.slane %v105_v24, %v111_v10  ;;  %v618_v34 = vpack.c.bf16 %v69_v26, %v68_v22  ;;  %v38_v36 = vld [vmem:[%s949_s1 + $0x70] sm:$0xff] }
  0x16   :  { %581 = vmatprep.subr.bf16.mxu0 %v580_v6  ;;  %v39_v37 = vld [vmem:[%s949_s1 + $0x78] sm:$0xff] }
  0x17   :  { %611 = vmatpush3.bf16.msra.mxu1 %v610_v5  ;;  %v121_v38 = vcombine.high %v119_v32, %v119_v32 }
  0x18   :  { %613 = vmatprep.subr.bf16.mxu1 %v612_v11 }
  0x19   :  { %583 = vmatpush3.bf16.msra.mxu0 %v582_v16 }
  0x1a   :  { %585 = vmatprep.subr.bf16.mxu0 %v584_v19 }
  0x1b   :  { %615 = vmatpush3.bf16.msra.mxu1 %v614_v17 }
  0x1c   :  { %11 = vsyncpa [#allocation4], 0  ;;  %617 = vmatprep.subr.bf16.mxu1 %v616_v25  ;;  %v620_v39 = vpack.c.bf16 %v87_v30, %v86_v29  ;;  %200 = vmatprep.mubr.f32.mxu0 %v120_v31  ;;  %v70_v40 = vld [vmem:[%s949_s1 + $0x170] sm:$0xff]  ;;  %v71_v41 = vld [vmem:[%s949_s1 + $0x178] sm:$0xff]  ;;  %v590_v42 = vpack.c.bf16 %v39_v37, %v38_v36  ;;  %v671_v47 = vmov 0.0|0.0   ;;  %v672_v50 = vmov 0.0  }
  0x1d   :  { %270 = vmatprep.mubr.f32.mxu1 %v121_v38  ;;  %587 = vmatpush3.bf16.msra.mxu0 %v586_v33  ;;  %v622_v43 = vpack.c.bf16 %v71_v41, %v70_v40  ;;  %v88_v44 = vld [vmem:[%s949_s1 + $0x200] sm:$0xff]  ;;  %v89_v45 = vld [vmem:[%s949_s1 + $0x208] sm:$0xff]  ;;  %v90_v48 = vld [vmem:[%s949_s1 + $0x210] sm:$0xff]  ;;  %vm673_vm0 = vmmov 0   ;;  %vm133_vm1 = vcmask 523264   ;;  %vm353_vm2 = vcmask 162816  }
  0x1e   :  { %589 = vmatprep.subr.bf16.mxu0 %v588_v35  ;;  %v625_v46 = vpack.c.bf16 %v89_v45, %v88_v44  ;;  %v91_v49 = vld [vmem:[%s949_s1 + $0x218] sm:$0xff]  ;;  %v92_v52 = vld [vmem:[%s949_s1 + $0x220] sm:$0xff]  ;;  %v93_v53 = vld [vmem:[%s949_s1 + $0x228] sm:$0xff]  ;;  %v352_v12 = vstv %s952_s4  ;;  %s674_s19 = smov [#allocation3]   ;;  %vm434_vm3 = vcmask 8192  }
  0x1f   :  { %619 = vmatpush3.bf16.msra.mxu1 %v618_v34  ;;  %v628_v51 = vpack.c.bf16 %v91_v49, %v90_v48  ;;  %v631_v54 = vpack.c.bf16 %v93_v53, %v92_v52  ;;  %v94_v55 = vld [vmem:[%s949_s1 + $0x230] sm:$0xff]  ;;  %v95_v56 = vld [vmem:[%s949_s1 + $0x238] sm:$0xff]  ;;  %v451_v58 = vld.sshfl [vmem:[%s948_s0 + $0x8] sm:$0x3 pattern:$0x76325410] }
  0x20   :  { %621 = vmatprep.subr.bf16.mxu1 %v620_v39  ;;  %v634_v57 = vpack.c.bf16 %v95_v56, %v94_v55  ;;  %v450_v60 = vld [vmem:[%s950_s2] ss:$0 sm:$0xff]  ;;  %s442_s20 = sshll.u32 %s674_s19, 4  ;;  %s443_s20 = int_to_ptr.vmem [resolvable:$true] %s442_s20 }
  0x21   :  { %591 = vmatpush3.bf16.msra.mxu0 %v590_v42  ;;  %v350_v11 = vld [vmem:[%s951_s3] sm:$0x1]  ;;  %s646_s21 = scalar_lea.vmem %s443_s20, 16  ;;  %s650_s3 = scalar_lea.vmem %s443_s20, 32 }
  0x22   :  { %624 = vmatprep.subr.bf16.mxu0 %v671_v47  ;;  %p647_p0 = scmp.ne.s32.totalorder %s443_s20, %s646_s21  ;;  %p651_p1 = scmp.lt.s32.totalorder %s443_s20, %s443_s20 }
  0x23   :  { %623 = vmatpush3.bf16.msra.mxu1 %v622_v43  ;;  %p652_p2 = scmp.lt.s32.totalorder %s650_s3, %s646_s21 }
  0x24   :  { %555 = vmatprep.subr.mxu1 %v672_v50  ;;  %201 = vmatmul.mubr.f32.vlgmr.msra.gmra.mrb[0].mxu0 %v112_v23 }
  0x25   :  { %626 = vmatpush3.bf16.msra.mxu0 %v625_v46  ;;  %552 = vmatprep.mubr.msk.f32.mxu0 %vm673_vm0, %v672_v50  ;;  %p653_p3 = por %p652_p2, %p651_p1 }
  0x26   :  { %271 = vmatmul.mubr.f32.vlgmr.msra.gmra.mrb[0].mxu1 %v119_v32  ;;  %627 = vmatprep.subr.bf16.mxu0 %v671_v47 }
  0x27   :  { %557 = vmatprep.mubr.msk.f32.mxu1 %vm673_vm0, %v672_v50  ;;  %p654_p4 = pnand %p653_p3, %p647_p0 }
  0x29   :  { %629 = vmatpush3.bf16.msra.mxu0 %v628_v51 }
  0x2a   :  { %630 = vmatprep.subr.bf16.mxu0 %v671_v47 }
  0x2d   :  { %632 = vmatpush3.bf16.msra.mxu0 %v631_v54 }
  0x2e   :  { %633 = vmatprep.subr.bf16.mxu0 %v671_v47 }
  0x31   :  { %635 = vmatpush3.bf16.msra.mxu0 %v634_v57 }
  0x34   :  { %553 = vmatmul.mubr.msk.f32.vlgmr.msra.gmra.mrb[2].mxu0 %vm133_vm1, %v451_v58 }
  0xf7   :  { %v487_v59 = vpop.f32.mrb[0].mxu0 }
  0xf8   :  { %v488_v61 = vpop.f32.mrb[1].mxu0 }
  0xf9   :  { %v522_v62 = vpop.f32.mrb[0].mxu1  ;;  %v489_v63 = vadd.f32 %v488_v61, %v487_v59 }
  0xfa   :  { %v523_v0 = vpop.f32.mrb[1].mxu1 }
  0xfb   :  { %v524_v1 = vadd.f32 %v523_v0, %v522_v62  ;;  %v203_v2 = vadd.f32 %v489_v63, %v450_v60 }
  0xfd   :  { %v273_v3 = vadd.f32 %v524_v1, %v203_v2 }
 0x107   :  { %v342_v4 = vpop.f32.mrb[2].mxu0 }
 0x108   :  { %v343_v5 = vadd.f32 %v342_v4, %v273_v3  ;;  %v554_v6 = vpop.f32.mrb[3].mxu0 }
 0x10a   :  { %v346_v7 = vmul.f32 0.5, %v343_v5 }
 0x10c   :  { %642 = vtanh.f32 %v346_v7 }
 0x116   :  { %v643_v8 = vpop.eup %642 }
 0x117   :  { %v348_v9 = vmul.f32 0.5, %v643_v8 }
 0x119   :  { %v349_v10 = vadd.f32 0.5, %v348_v9 }
 0x11b   :  { %556 = vmatpush3.xpose.msk.msra.mxu1 %vm353_vm2, %v349_v10 }
 0x11e   :  { %558 = vmatmul.mubr.msk.f32.vlgmr.msra.gmra.mrb[2].mxu1 %vm353_vm2, %v350_v11 }
 0x1f1   :  { %v426_v13 = vpop.f32.mrb[2].mxu1 }
 0x1f2   :  { %v427_v14 = vadd.f32 %v426_v13, %v352_v12  ;;  %v559_v15 = vpop.f32.mrb[3].mxu1 }
 0x1f4   :  { %v430_v16 = vmul.f32 0.5, %v427_v14 }
 0x1f6   :  { %644 = vtanh.f32 %v430_v16 }
 0x200   :  { %v645_v17 = vpop.eup %644 }
 0x201   :  { %v432_v18 = vmul.f32 0.5, %v645_v17 }
 0x203   :  { %v433_v19 = vadd.f32 0.5, %v432_v18 }
 0x205   :  { %435 = vst.msk [vmem:[#allocation3] sm:$0x1] %vm434_vm3, %v433_v19 }
 0x206   :  { %657 = shalt.err (!%p654_p4)
}
 0x207   :  { %s658_s23 = scalar_lea.hbm %s953_s5, 16 }
 0x208   :  { %p659_p5 = scmp.ne.s32.totalorder %s953_s5, %s658_s23  ;;  %p662_p6 = scmp.lt.u32.totalorder %s658_s23, %s953_s5 }
 0x20a   :  { %p664_p7 = pnand %p662_p6, %p659_p5 }
 0x20c   :  { %667 = shalt.err (!%p664_p7)
}
 0x20d   :  { %445 = dma.vmem_to_hbm [thread:$0]  %s443_s20, 16, %s953_s5, [#allocation4]  }
 0x20e   :  { %668 = dma.done.wait [#allocation4], 16  }
 0x20f   :  { %669 = vsyncadd [#allocation4], 4294967280 }
 0x210   :  { %449 = vsyncpa [#allocation4], 1 }

</bundles_post_ra>
